<compile_context>
chip_gen: v5e
topology: v5e:2x2
jax: 0.10.0
libtpu: 0.0.40
codegen_flags: <defaults>
</compile_context>

<pallas_src>
import jax
import jax.numpy as jnp
from jax.experimental import pallas as pl
from jax.experimental.pallas import tpu as pltpu


def _temperature_kernel(log_temp_ref, out_ref):
    # log_temp_ref: (1, 1) f32 in SMEM — scalar load, no padded-tile input DMA.
    # out_ref:      (1, 1) f32 in VMEM — exp is an EUP (vector) op, so broadcast
    #               the scalar into a tiny tile and store it.
    lt = log_temp_ref[0, 0]
    out_ref[...] = jnp.exp(jnp.full((1, 1), lt, dtype=jnp.float32))


@jax.jit
def temperature_holder_forward_pallas(log_temperature: jax.Array) -> jax.Array:
    """exp(log_temperature) via a standalone Pallas kernel (spec path).

    Kept for the exercise; for production prefer the fused path below or fuse
    the exp into the consumer kernel — at 4 bytes of work a standalone custom
    call is >99% launch/DMA overhead on every TPU generation.
    """
    # Present the 0-d parameter as a (1, 1) f32 array for the SMEM BlockSpec.
    log_temp_2d = jnp.reshape(log_temperature, (1, 1)).astype(jnp.float32)

    out_2d = pl.pallas_call(
        _temperature_kernel,
        out_shape=jax.ShapeDtypeStruct((1, 1), jnp.float32),
        in_specs=[pl.BlockSpec(memory_space=pltpu.MemorySpace.SMEM)],
        out_specs=pl.BlockSpec(memory_space=pltpu.MemorySpace.VMEM),
    )(log_temp_2d)

    # Back to a 0-d scalar, matching torch.exp(self.log_temperature).
    return out_2d[0, 0]


@jax.jit
def temperature_holder_forward_fused(log_temperature: jax.Array) -> jax.Array:
    """Recommended/default path: no custom call, XLA fuses into the consumer."""
    return jnp.exp(log_temperature)


class TemperatureHolder:
    """JAX/Pallas port of pfrl's TemperatureHolder.

    __call__ defaults to the fused jnp.exp path (performance-review default);
    pass use_pallas=True to exercise the standalone Pallas kernel.
    """

    def __init__(self, initial_log_temperature: float = 0.0):
        # Stored as f32 so no convert is needed at call time.
        self.log_temperature = jnp.asarray(initial_log_temperature, dtype=jnp.float32)

    def __call__(self, use_pallas: bool = False) -> jax.Array:
        if use_pallas:
            return temperature_holder_forward_pallas(self.log_temperature)
        return temperature_holder_forward_fused(self.log_temperature)


if __name__ == "__main__":
    # Deterministic setup. The module takes no forward inputs; exercise it with
    # the default init (log T = 0 -> T = 1) and a random init.
    key = jax.random.PRNGKey(0)
    random_init = float(jax.random.normal(key, (), dtype=jnp.float32))

    holder_default = TemperatureHolder()                            # log T = 0.0
    holder_random = TemperatureHolder(initial_log_temperature=random_init)

    # Pallas kernel path (spec), run once and blocked on.
    t_default_pallas = jax.block_until_ready(holder_default(use_pallas=True))
    t_random_pallas = jax.block_until_ready(holder_random(use_pallas=True))

    # Default fused path.
    t_default_fused = jax.block_until_ready(holder_default())
    t_random_fused = jax.block_until_ready(holder_random())

    # Reference checks against plain JAX.
    assert t_default_pallas.shape == () and t_default_pallas.dtype == jnp.float32
    assert t_random_pallas.shape == () and t_random_pallas.dtype == jnp.float32
    assert jnp.allclose(t_default_pallas, jnp.exp(jnp.float32(0.0)), rtol=1e-6)
    assert jnp.allclose(t_random_pallas, jnp.exp(jnp.float32(random_init)), rtol=1e-6)
    assert jnp.allclose(t_default_fused, t_default_pallas, rtol=1e-6)
    assert jnp.allclose(t_random_fused, t_random_pallas, rtol=1e-6)

    print("KERNEL_OK")
</pallas_src>

<mosaic_0001>
module attributes {stable_mosaic.version = 11 : i64} {
  func.func @_temperature_kernel(%arg0: memref<1x1xf32, #tpu.memory_space<smem>>, %arg1: memref<1x1xf32, #tpu.memory_space<vmem>>) attributes {dimension_semantics = [], scalar_prefetch = 0 : i64, scratch_operands = 0 : i64, tpu.core_type = #tpu.core_type<tc>} {
    %c0 = arith.constant 0 : index
    %c0_0 = arith.constant 0 : index
    %0 = memref.load %arg0[%c0, %c0_0] : memref<1x1xf32, #tpu.memory_space<smem>>
    %1 = vector.broadcast %0 : f32 to vector<1x1xf32>
    %2 = math.exp %1 : vector<1x1xf32>
    %c0_1 = arith.constant 0 : index
    %c0_2 = arith.constant 0 : index
    %3 = vector.load %arg1[%c0_1, %c0_2] : memref<1x1xf32, #tpu.memory_space<vmem>>, vector<1x1xf32>
    tpu.vector_store %arg1[%c0_1, %c0_2], %2 {strides = array<i32>} : memref<1x1xf32, #tpu.memory_space<vmem>>, vector<1x1xf32>,
    return
  }
}

</mosaic_0001>

<bundles_post_ra>
// kernel: temperature_holder_forward_pallas.1
= control target key start
LH: loop header
LB: loop body
LE: loop exit
PB: predicated region body
PF: predicated region fallthrough
CT: control target
= control target key end

     0   :  { %s78_s0 = inlined_call_operand.<no memory space> [shape: f32[1,1], index: 0, kind: input, shape index: {}]   ;;  %s79_s1 = inlined_call_operand.hbm [shape: f32[1,1], index: 1, kind: output, shape index: {}]  }
   0x1   :  { %v11_v0 = vstv %s78_s0 }
   0x2   :  { %7 = vsyncpa [#allocation4], 0  ;;  %v12_v1 = vmul.f32 1.442695, %v11_v0  ;;  %s61_s8 = smov [#allocation3]   ;;  %s23_s12 = sshll.u32 %s79_s1, 4  ;;  %s24_s12 = int_to_ptr.hbm [resolvable:$true] %s23_s12 }
   0x3   :  { %s21_s9 = sshll.u32 %s61_s8, 4  ;;  %vm14_vm0 = vcmask 0   ;;  %s22_s9 = int_to_ptr.vmem [resolvable:$true] %s21_s9 }
   0x4   :  { %33 = vpow2.f32 %v12_v1 }
   0xa   :  { %v34_v2 = vpop.eup %33 }
   0xb   :  { %15 = vst.msk [vmem:[#allocation3] sm:$0x1] %vm14_vm0, %v34_v2 }
   0xc   :  { %26 = dma.vmem_to_hbm [thread:$0]  %s22_s9, 16, %s24_s12, [#allocation4]  }
   0xd   :  { %59 = dma.done.wait [#allocation4], 16  }
   0xe   :  { %60 = vsyncadd [#allocation4], 4294967280 }
   0xf   :  { %31 = vsyncpa [#allocation4], 1 }

</bundles_post_ra>
